<compile_context>
chip_gen: v7x
topology: tpu7x:2x2x1
jax: 0.10.0
libtpu: 0.0.40
codegen_flags: <defaults>
</compile_context>

<pallas_src>
import jax
import jax.numpy as jnp
from jax.experimental import pallas as pl
from jax.experimental.pallas import tpu as pltpu


# ---------------------------------------------------------------------------
# Kernels
# ---------------------------------------------------------------------------
def _make_kernel(contract_eq, in_place):
    """Build the per-tile kernel.

    contract_eq : "bmk,bnk->bmn" (features as (B,N,TK)) or
                  "bmk,bkn->bmn" (features pre-transposed to (B,TK,N))
    in_place    : accumulate directly in the (f32) output block, no scratch.
    """
    if in_place:
        def kernel(att_ref, feat_ref, out_ref):
            k = pl.program_id(1)

            @pl.when(k == 0)
            def _init():
                out_ref[...] = jnp.zeros_like(out_ref)

            out_ref[...] += jnp.einsum(
                contract_eq, att_ref[...], feat_ref[...],
                preferred_element_type=jnp.float32)

            @pl.when(k == pl.num_programs(1) - 1)
            def _finalize():
                fm = out_ref[...]
                # F.normalize(p=2, eps=1e-12): divide by max(||fm||_2, 1e-12).
                sq = jnp.sum(fm * fm, axis=-1, keepdims=True)
                out_ref[...] = fm * jax.lax.rsqrt(jnp.maximum(sq, 1e-24))
        return kernel

    def kernel(att_ref, feat_ref, out_ref, acc_ref):
        k = pl.program_id(1)

        @pl.when(k == 0)
        def _init():
            acc_ref[...] = jnp.zeros_like(acc_ref)

        acc_ref[...] += jnp.einsum(
            contract_eq, att_ref[...], feat_ref[...],
            preferred_element_type=jnp.float32)

        @pl.when(k == pl.num_programs(1) - 1)
        def _finalize():
            fm = acc_ref[...]
            sq = jnp.sum(fm * fm, axis=-1, keepdims=True)
            out_ref[...] = (fm * jax.lax.rsqrt(jnp.maximum(sq, 1e-24))
                            ).astype(out_ref.dtype)
    return kernel


# ---------------------------------------------------------------------------
# Tiling helpers
# ---------------------------------------------------------------------------
def _round_up(x, m):
    return -(-x // m) * m


def _largest_divisor_leq(n, target):
    target = max(1, min(n, target))
    for d in range(target, 0, -1):
        if n % d == 0:
            return d
    return 1


def _tpu_budget():
    """Per-chip (vmem_capacity_bytes, num_tensorcores) with safe fallbacks."""
    vmem_cap = 64 << 20   # conservative default: v7x per-TC VMEM
    num_cores = 2         # conservative default: assume 2 TCs want work
    try:
        info = pltpu.get_tpu_info()
        vmem_cap = int(getattr(info, "vmem_capacity_bytes", vmem_cap))
        cores = None
        for attr in ("num_cores", "tensorcores_per_chip",
                     "num_tensorcores", "core_count"):
            v = getattr(info, attr, None)
            if v:
                cores = int(v)
                break
        if cores is None:
            # v7x is the only generation with <= 64 MiB per-TC VMEM and 2 TCs.
            cores = 2 if vmem_cap <= (64 << 20) else 1
        num_cores = cores
    except Exception:
        pass
    return vmem_cap, num_cores


def _choose_tiles(B, M, N, HW, itemsize, feat_transposed, in_place,
                  budget_bytes, num_cores, max_tb=16):
    """Pick (TB, TK, HW_padded) so ALL resident VMEM (double-buffered inputs,
    double-buffered output, accumulator) fits the per-chip budget."""
    m8 = _round_up(M, 8)
    feat_rows = N if feat_transposed else _round_up(N, 8)   # sublane rows / k
    n_lane = N if feat_transposed else _round_up(N, 128)    # acc/out lane pad
    hw128 = _round_up(HW, 128)

    def total_bytes(tb, tk):
        in_b = 2 * tb * tk * (m8 + feat_rows) * itemsize        # double-buffered
        out_b = 2 * tb * m8 * n_lane * itemsize                 # double-buffered
        acc_b = 0 if in_place else tb * m8 * n_lane * 4
        return in_b + out_b + acc_b

    # --- batch tile: as large as the budget allows (amortizes step overhead)
    tb = _largest_divisor_leq(B, max_tb)
    while tb > 1 and total_bytes(tb, 128) > budget_bytes:
        tb = _largest_divisor_leq(B, tb - 1)
    # On 2-TensorCore chips make sure the parallel axis has >= num_cores steps.
    if num_cores >= 2 and B >= num_cores and B // tb < num_cores:
        tb = _largest_divisor_leq(B, max(1, B // num_cores))

    # --- spatial tile: largest multiple of 128 within the remaining budget,
    #     then rebalance so the padded spatial extent is minimal.
    fixed = total_bytes(tb, 0)
    per_tk = 2 * tb * (m8 + feat_rows) * itemsize
    tk_cap = max(128, ((budget_bytes - fixed) // max(per_tk, 1)) // 128 * 128)
    tk_cap = min(tk_cap, hw128)
    n_k = -(-hw128 // tk_cap)
    tk = _round_up(-(-hw128 // n_k), 128)
    hw_padded = n_k * tk
    return tb, tk, hw_padded


# ---------------------------------------------------------------------------
# Wrapper
# ---------------------------------------------------------------------------
def attention_pooling(features, attentions, norm=2):
    """Pallas equivalent of AttentionPooling.forward (4-D features, norm=2).

    features   : (B, N, H, W)
    attentions : (B, M, H, W)   -- must share H, W with features
    returns    : (B, M, N)
    """
    assert norm == 2, "only the default norm=2 path is implemented in-kernel"
    B, N, H, W = features.shape
    Bb, M, AH, AW = attentions.shape
    assert Bb == B and AH == H and AW == W
    # TODO(synk): bilinear F.interpolate(align_corners=True) for AH != H / AW != W,
    # the norm=1 / norm=3 branches, and the 5-D features einsum are not
    # implemented in-kernel.

    HW = H * W
    dtype = features.dtype
    itemsize = jnp.dtype(dtype).itemsize
    feat_transposed = (N % 128 == 0)
    in_place = (jnp.dtype(dtype) == jnp.dtype(jnp.float32))

    vmem_cap, num_cores = _tpu_budget()
    vmem_limit = min(64 << 20, (vmem_cap * 3) // 4)   # 48 MiB on v7x, 64 MiB else
    budget = max(8 << 20, vmem_limit - (4 << 20))     # headroom for Mosaic scratch

    TB, TK, HWp = _choose_tiles(B, M, N, HW, itemsize, feat_transposed,
                                in_place, budget, num_cores)

    att = attentions.reshape(B, M, HW)
    feat = features.reshape(B, N, HW)
    pad = HWp - HW
    if pad:
        # Zero padding of the reduced (spatial) axis is exact for the sum.
        att = jnp.pad(att, ((0, 0), (0, 0), (0, pad)))
        feat = jnp.pad(feat, ((0, 0), (0, 0), (0, pad)))

    if feat_transposed:
        # One-time HBM-layout transpose in XLA: (B, HWp, N), lane-dense in N.
        feat = feat.transpose(0, 2, 1)
        feat_spec = pl.BlockSpec((TB, TK, N), lambda b, k: (b, k, 0))
        contract_eq = "bmk,bkn->bmn"
    else:
        feat_spec = pl.BlockSpec((TB, N, TK), lambda b, k: (b, 0, k))
        contract_eq = "bmk,bnk->bmn"

    att_spec = pl.BlockSpec((TB, M, TK), lambda b, k: (b, 0, k))
    out_spec = pl.BlockSpec((TB, M, N), lambda b, k: (b, 0, 0))
    scratch = [] if in_place else [pltpu.VMEM((TB, M, N), jnp.float32)]

    cost = pl.CostEstimate(
        flops=2 * B * M * N * HW,
        transcendentals=B * M,  # one rsqrt per output row
        bytes_accessed=(B * (M + N) * HW + B * M * N) * itemsize,
    )

    out = pl.pallas_call(
        _make_kernel(contract_eq, in_place),
        out_shape=jax.ShapeDtypeStruct((B, M, N), dtype),
        grid_spec=pltpu.PrefetchScalarGridSpec(
            num_scalar_prefetch=0,
            # Batch axis first (parallel, megacore-shardable);
            # spatial reduction axis last (arbitrary, accumulator pattern).
            grid=(B // TB, HWp // TK),
            in_specs=[att_spec, feat_spec],
            out_specs=out_spec,
            scratch_shapes=scratch,
        ),
        compiler_params=pltpu.CompilerParams(
            dimension_semantics=("parallel", "arbitrary"),
            vmem_limit_bytes=vmem_limit,
        ),
        cost_estimate=cost,
    )(att, feat)
    return out


# ---------------------------------------------------------------------------
# Reference + self-test
# ---------------------------------------------------------------------------
def _reference(features, attentions):
    fm = jnp.einsum("imjk,injk->imn", attentions, features)
    l2 = jnp.maximum(jnp.linalg.norm(fm, axis=-1, keepdims=True), 1e-12)
    return fm / l2


if __name__ == "__main__":
    key = jax.random.PRNGKey(0)
    k1, k2, k3, k4 = jax.random.split(key, 4)

    ok = True

    # Case 1: small N (< 128) -> native (B, N, HW) layout, f32 in-place acc.
    B, N, M, H, W = 2, 4, 8, 16, 16
    features = jax.random.normal(k1, (B, N, H, W), dtype=jnp.float32)
    attentions = jax.random.normal(k2, (B, M, H, W), dtype=jnp.float32)
    out = jax.block_until_ready(attention_pooling(features, attentions))
    ref = _reference(features, attentions)
    ok &= out.shape == (B, M, N)
    ok &= bool(jnp.allclose(out, ref, atol=1e-5, rtol=1e-5))

    # Case 2: N multiple of 128 -> pre-transposed feature layout, and an
    # HW (14*14 = 196) that exercises the zero-padding path.
    B2, N2, M2, H2, W2 = 2, 128, 8, 14, 14
    features2 = jax.random.normal(k3, (B2, N2, H2, W2), dtype=jnp.float32)
    attentions2 = jax.random.normal(k4, (B2, M2, H2, W2), dtype=jnp.float32)
    out2 = jax.block_until_ready(attention_pooling(features2, attentions2))
    ref2 = _reference(features2, attentions2)
    ok &= out2.shape == (B2, M2, N2)
    ok &= bool(jnp.allclose(out2, ref2, atol=1e-5, rtol=1e-5))

    assert ok, (float(jnp.max(jnp.abs(out - ref))),
                float(jnp.max(jnp.abs(out2 - ref2))))
    print("KERNEL_OK")
</pallas_src>

<mosaic_0001>
module attributes {stable_mosaic.version = 11 : i64} {
  func.func @kernel(%arg0: i32, %arg1: i32, %arg2: memref<1x8x256xf32, #tpu.memory_space<vmem>>, %arg3: memref<1x4x256xf32, #tpu.memory_space<vmem>>, %arg4: memref<1x8x4xf32, #tpu.memory_space<vmem>>) attributes {dimension_semantics = [#tpu.dimension_semantics<parallel>, #tpu.dimension_semantics<arbitrary>], iteration_bounds = array<i64: 2, 1>, scalar_prefetch = 0 : i64, scratch_operands = 0 : i64, tpu.core_type = #tpu.core_type<tc>, window_params = [{transform_indices = @transform_0, window_bounds = array<i64: 1, 8, 256>}, {transform_indices = @transform_1, window_bounds = array<i64: 1, 4, 256>}, {transform_indices = @transform_2, window_bounds = array<i64: 1, 8, 4>}]} {
    %c0_i32 = arith.constant 0 : i32
    %0 = arith.cmpi eq, %arg1, %c0_i32 : i32
    %1 = arith.extui %0 : i1 to i32
    %c0_i32_0 = arith.constant 0 : i32
    %2 = arith.cmpi ne, %1, %c0_i32_0 : i32
    scf.if %2 {
      %cst_14 = arith.constant 0.000000e+00 : f32
      %12 = vector.broadcast %cst_14 : f32 to vector<1x8x4xf32>
      %c0_15 = arith.constant 0 : index
      %c0_16 = arith.constant 0 : index
      %c0_17 = arith.constant 0 : index
      %13 = vector.load %arg4[%c0_15, %c0_16, %c0_17] : memref<1x8x4xf32, #tpu.memory_space<vmem>>, vector<1x8x4xf32>
      tpu.vector_store %arg4[%c0_15, %c0_16, %c0_17], %12 {strides = array<i32>} : memref<1x8x4xf32, #tpu.memory_space<vmem>>, vector<1x8x4xf32>,
    } else {
    }
    %c0 = arith.constant 0 : index
    %c0_1 = arith.constant 0 : index
    %c0_2 = arith.constant 0 : index
    %3 = vector.load %arg4[%c0, %c0_1, %c0_2] : memref<1x8x4xf32, #tpu.memory_space<vmem>>, vector<1x8x4xf32>
    %c0_3 = arith.constant 0 : index
    %c0_4 = arith.constant 0 : index
    %c0_5 = arith.constant 0 : index
    %4 = vector.load %arg2[%c0_3, %c0_4, %c0_5] : memref<1x8x256xf32, #tpu.memory_space<vmem>>, vector<1x8x256xf32>
    %c0_6 = arith.constant 0 : index
    %c0_7 = arith.constant 0 : index
    %c0_8 = arith.constant 0 : index
    %5 = vector.load %arg3[%c0_6, %c0_7, %c0_8] : memref<1x4x256xf32, #tpu.memory_space<vmem>>, vector<1x4x256xf32>
    "tpu.trace_start"() <{level = 10 : i32, message = "bmk,bnk->bmn"}> : () -> ()
    %cst = arith.constant dense<0.000000e+00> : vector<1x8x4xf32>
    %6 = tpu.matmul %4, %5, %cst {dimension_numbers = #tpu.dot_dimension_numbers<[2], [2], [1], [1], [0, 0, 0, 1, 1, 1], [0], [0]>} : vector<1x8x256xf32>, vector<1x4x256xf32>, vector<1x8x4xf32> -> vector<1x8x4xf32>
    "tpu.trace_stop"() : () -> ()
    %7 = arith.addf %3, %6 : vector<1x8x4xf32>
    %c0_9 = arith.constant 0 : index
    %c0_10 = arith.constant 0 : index
    %c0_11 = arith.constant 0 : index
    %8 = vector.load %arg4[%c0_9, %c0_10, %c0_11] : memref<1x8x4xf32, #tpu.memory_space<vmem>>, vector<1x8x4xf32>
    tpu.vector_store %arg4[%c0_9, %c0_10, %c0_11], %7 {strides = array<i32>} : memref<1x8x4xf32, #tpu.memory_space<vmem>>, vector<1x8x4xf32>,
    %c0_i32_12 = arith.constant 0 : i32
    %9 = arith.cmpi eq, %arg1, %c0_i32_12 : i32
    %10 = arith.extui %9 : i1 to i32
    %c0_i32_13 = arith.constant 0 : i32
    %11 = arith.cmpi ne, %10, %c0_i32_13 : i32
    scf.if %11 {
      %c0_14 = arith.constant 0 : index
      %c0_15 = arith.constant 0 : index
      %c0_16 = arith.constant 0 : index
      %12 = vector.load %arg4[%c0_14, %c0_15, %c0_16] : memref<1x8x4xf32, #tpu.memory_space<vmem>>, vector<1x8x4xf32>
      %13 = arith.mulf %12, %12 : vector<1x8x4xf32>
      %cst_17 = arith.constant dense<0.000000e+00> : vector<1x8xf32>
      %14 = vector.multi_reduction <add>, %13, %cst_17 [2] : vector<1x8x4xf32> to vector<1x8xf32>
      %15 = vector.shape_cast %14 : vector<1x8xf32> to vector<1x8x1xf32>
      %cst_18 = arith.constant 1.000000e-24 : f32
      %16 = vector.broadcast %cst_18 : f32 to vector<1x8x1xf32>
      %17 = arith.maximumf %15, %16 : vector<1x8x1xf32>
      %18 = math.rsqrt %17 : vector<1x8x1xf32>
      %19 = vector.broadcast %18 : vector<1x8x1xf32> to vector<1x8x4xf32>
      %20 = arith.mulf %12, %19 : vector<1x8x4xf32>
      %c0_19 = arith.constant 0 : index
      %c0_20 = arith.constant 0 : index
      %c0_21 = arith.constant 0 : index
      %21 = vector.load %arg4[%c0_19, %c0_20, %c0_21] : memref<1x8x4xf32, #tpu.memory_space<vmem>>, vector<1x8x4xf32>
      tpu.vector_store %arg4[%c0_19, %c0_20, %c0_21], %20 {strides = array<i32>} : memref<1x8x4xf32, #tpu.memory_space<vmem>>, vector<1x8x4xf32>,
    } else {
    }
    return
  }
  func.func @transform_0(%arg0: i32, %arg1: i32) -> (i32, i32, i32) {
    %c0_i32 = arith.constant 0 : i32
    %c0_i32_0 = arith.constant 0 : i32
    return %arg0, %c0_i32, %arg1 : i32, i32, i32
  }
  func.func @transform_1(%arg0: i32, %arg1: i32) -> (i32, i32, i32) {
    %c0_i32 = arith.constant 0 : i32
    %c0_i32_0 = arith.constant 0 : i32
    return %arg0, %c0_i32, %arg1 : i32, i32, i32
  }
  func.func @transform_2(%arg0: i32, %arg1: i32) -> (i32, i32, i32) {
    %c0_i32 = arith.constant 0 : i32
    %c0_i32_0 = arith.constant 0 : i32
    %c0_i32_1 = arith.constant 0 : i32
    return %arg0, %c0_i32, %c0_i32_0 : i32, i32, i32
  }
}

</mosaic_0001>

<bundles_post_ra>
// kernel: tpu_custom_call.1
= control target key start
LH: loop header
LB: loop body
LE: loop exit
PB: predicated region body
PF: predicated region fallthrough
CT: control target
= control target key end

     0   :  { %7 = vsyncpa [#allocation3], 0  ;;  %s806_s0 = inlined_call_operand.hbm [shape: f32[2,8,256], index: 0, kind: input, shape index: {}]   ;;  %s807_s1 = inlined_call_operand.hbm [shape: f32[2,4,256], index: 1, kind: input, shape index: {}]   ;;  %s808_s2 = inlined_call_operand.vmem [shape: f32[2,8,4], index: 2, kind: output, shape index: {}]  }
   0x1   :  { %9 = vsyncpa [#allocation3 + $0x1], 0 }
   0x2   :  { %10 = vsyncpa [#allocation5], 0 }
   0x3   :  { %12 = vsyncpa [#allocation5 + $0x1], 0  ;;  %s636_s9 = smov 0   ;;  %s638_s10 = smov 0  }
   0x4   :  { %s640_s11 = smov 0   ;;  %s642_s12 = smov 0  }
   0x5   :  { %s644_s13 = smov 0   ;;  %s646_s14 = smov 0  }
   0x6 LB: > { %s420_s15 = sadd.s32 4294967295, %s616_s14   ;;  %s30_s16 = sadd.s32 1, %s612_s13  ;;  %s616_s14 = sphi %s646_s14, %s18_s14   ;;  %s612_s13 = sphi %s644_s13, %s822_s13   ;;  %s608_s12 = sphi %s642_s12, %s821_s12   ;;  %s604_s11 = sphi %s640_s11, %s820_s11   ;;  %s600_s10 = sphi %s638_s10, %s819_s10   ;;  %s596_s9 = sphi %s636_s9, %s818_s9  }
   0x7   : > { %p32_p0 = scmp.ge.s32.totalorder %s30_s16, 2  ;;  %s39_s17 = sadd.s32 1, %s604_s11 }
   0x8   : > { %p46_p1 = scmp.ne.s32.totalorder %s604_s11, %s600_s10  ;;  %p47_p2 = scmp.eq.s32.totalorder %s616_s14, 0 }
   0x9   : > { %s824_s16 = smov (%p32_p0, %s30_s16), 0  ;;  %p52_p4 = scmp.ne.s32.totalorder %s600_s10, %s596_s9 }
   0xa   : > { %p672_p3 = por %p47_p2, %p46_p1  ;;  %s34_s19 = ssub.s32 %s612_s13, %s824_s16 }
   0xb   : > { %p53_p5 = scmp.eq.s32.totalorder %s420_s15, 0  ;;  %p37_p6 = scmp.eq.s32.totalorder %s34_s19, 0 }
   0xc   : > { %p449_p8 = scmp.lt.s32.totalorder %s616_s14, 2  ;;  %s688_s22 = sand.u32 1, %s604_s11  }
   0xd   : > { %p679_p7 = por %p53_p5, %p52_p4  ;;  %s436_s23 = sshll.u32 %s612_s13, 8 }
   0xe   : > { %s685_s21 = scalar_select %p37_p6, %s604_s11, %s39_s17  }
   0xf   : > { %s811_s20 = scalar_select %p679_p7, 1, 0 }
  0x10   : > { %s424_s24 = sshll.u32 %s688_s22, 4  ;;  %s695_s27 = scalar_lea.hbm %s806_s0, %s436_s23 }
  0x11   : > { %s134_s28 = scalar_lea.vmem [#allocation2], %s424_s24  ;;  %p699_p9 = pnand %p449_p8, %p672_p3 }
  0x12   : > { %s144_s29 = sshll.u32 %s134_s28, 4  ;;  %s131_s3 = scalar_lea.sflag [#allocation3], %s688_s22  ;;  %s703_s29 = int_to_ptr.vmem [resolvable:$true] %s144_s29 }
  0x13   : > { %s502_s4 = scalar_lea.hbm %s695_s27, 256  ;;  %p504_p13 = pneg %p699_p9 }
  0x14   : > { %p503_p12 = scmp.ne.s32.totalorder %s695_s27, %s502_s4  ;;  %s507_s7 = scalar_lea.hbm %s806_s0, 512 }
  0x15   : > { %p508_p2 = scmp.lt.u32.totalorder %s695_s27, %s806_s0  ;;  %p509_p3 = scmp.lt.u32.totalorder %s507_s7, %s502_s4 }
  0x16   : > { %p505_p0 = pnand %p504_p13, %p503_p12  ;;  %p511_p5 = scmp.lt.u32.totalorder %s502_s4, %s695_s27 }
  0x17   : > { %p510_p4 = por %p509_p3, %p508_p2 }
  0x18   : > { %p506_p1 = pneg %p505_p0 }
  0x19   : > { %p512_p6 = por %p511_p5, %p510_p4 }
  0x1b   : > { %p513_p8 = pnand %p512_p6, %p506_p1 }
  0x1d   : > { %516 = shalt.err (!%p513_p8)
}
  0x1e   : > { %s517_s15 = scalar_lea.vmem %s703_s29, 256  ;;  %s618_s17 = smov [#allocation2]  }
  0x1f   : > { %p518_p12 = scmp.ne.s32.totalorder %s703_s29, %s517_s15  ;;  %s522_s18 = sshll.u32 %s618_s17, 4  ;;  %s523_s18 = int_to_ptr.vmem [resolvable:$false] %s522_s18 }
  0x20   : > { %s524_s19 = scalar_lea.vmem %s523_s18, 512  ;;  %p525_p11 = scmp.lt.s32.totalorder %s703_s29, %s523_s18 }
  0x21   : > { %p520_p0 = pnand %p518_p12, %p504_p13  ;;  %p526_p2 = scmp.lt.s32.totalorder %s524_s19, %s517_s15 }
  0x23   : > { %p521_p10 = pneg %p520_p0  ;;  %p527_p3 = por %p526_p2, %p525_p11 }
  0x25   : > { %p528_p4 = pnand %p527_p3, %p521_p10 }
  0x27   : > { %531 = shalt.err (!%p528_p4)
}
  0x28   : > { %445 = dma.hbm_to_vmem [thread:$0]  (!%p699_p9), %s695_s27, 256, %s703_s29, %s131_s3  }
  0x29   : > { %p813_p1 = scmp.lt.s32.totalorder %s616_s14, 3  ;;  %p814_p5 = scmp.ge.s32.totalorder %s616_s14, 1 }
  0x2a   : > { %s427_s24 = sshll.u32 %s688_s22, 3  ;;  %s437_s25 = sshll.u32 %s612_s13, 7 }
  0x2b   : > { %p737_p6 = pnand %p814_p5, %p813_p1  ;;  %s746_s4 = scalar_lea.hbm %s807_s1, %s437_s25 }
  0x2c   : > { %s155_s5 = scalar_lea.vmem [#allocation4], %s427_s24  ;;  %s152_s27 = scalar_lea.sflag [#allocation5], %s688_s22 }
  0x2d   : > { %s815_s23 = scalar_select %p737_p6, 1, 0 }
  0x2e   : > { %s165_s6 = sshll.u32 %s155_s5, 4  ;;  %s532_s29 = scalar_lea.hbm %s746_s4, 128  ;;  %s166_s6 = int_to_ptr.vmem [resolvable:$true] %s165_s6 }
  0x2f   : > { %p533_p10 = scmp.ne.s32.totalorder %s746_s4, %s532_s29  ;;  %s537_s8 = scalar_lea.hbm %s807_s1, 256 }
  0x30   : > { %p538_p12 = scmp.lt.u32.totalorder %s746_s4, %s807_s1  ;;  %p539_p0 = scmp.lt.u32.totalorder %s537_s8, %s532_s29 }
  0x31   : > { %p535_p11 = pnand %p533_p10, %p504_p13  ;;  %p541_p3 = scmp.lt.u32.totalorder %s532_s29, %s746_s4 }
  0x32   : > { %p540_p2 = por %p539_p0, %p538_p12 }
  0x33   : > { %p536_p8 = pneg %p535_p11 }
  0x34   : > { %p542_p4 = por %p541_p3, %p540_p2 }
  0x36   : > { %p543_p1 = pnand %p542_p4, %p536_p8 }
  0x38   : > { %546 = shalt.err (!%p543_p1)
}
  0x39   : > { %s547_s22 = scalar_lea.vmem %s166_s6, 128  ;;  %s619_s17 = smov [#allocation4]  }
  0x3a   : > { %p548_p5 = scmp.ne.s32.totalorder %s166_s6, %s547_s22  ;;  %s552_s18 = sshll.u32 %s619_s17, 4  ;;  %s553_s18 = int_to_ptr.vmem [resolvable:$false] %s552_s18 }
  0x3b   : > { %s554_s19 = scalar_lea.vmem %s553_s18, 256  ;;  %p555_p7 = scmp.lt.s32.totalorder %s166_s6, %s553_s18 }
  0x3c   : > { %p550_p10 = pnand %p548_p5, %p504_p13  ;;  %p556_p6 = scmp.lt.s32.totalorder %s554_s19, %s547_s22 }
  0x3e   : > { %p551_p11 = pneg %p550_p10  ;;  %p557_p0 = por %p556_p6, %p555_p7 }
  0x40   : > { %p558_p12 = pnand %p557_p0, %p551_p11 }
  0x42   : > { %561 = shalt.err (!%p558_p12)
}
  0x43   : > { %448 = dma.hbm_to_vmem [thread:$0]  (!%p699_p9), %s746_s4, 128, %s166_s6, %s152_s27  }
  0x44   : > { %p816_p8 = scmp.ne.s32.totalorder %s815_s23, 0 }
  0x45   : > { %s176_s24 = sand.u32 (!%p816_p8), 1, %s600_s10   ;;  %p817_p13 = scmp.ne.s32.totalorder (!%p816_p8), %s811_s20, 0 }
  0x46   : > { %174 = sbr.rel (%p816_p8) target bundleno = 471 (0x1d7), region = 28  ;;  %s431_s25 = sshll.u32 (!%p816_p8), %s176_s24, 4 }
  0x47   : > { %s177_s26 = scalar_lea.sflag (!%p816_p8), [#allocation3], %s176_s24  ;;  %s180_s28 = scalar_lea.vmem (!%p816_p8), [#allocation2], %s431_s25 }
  0x4d   : > { %587 = dma.done.wait (%p817_p13), %s177_s26, 256  }
  0x4e   : > { %589 = vsyncadd (%p817_p13), %s177_s26, 4294967040  ;;  %s432_s5 = sshll.u32 %s176_s24, 3  ;;  %s186_s29 = scalar_lea.sflag [#allocation5], %s176_s24 }
  0x4f   : > { %s189_s30 = scalar_lea.vmem [#allocation4], %s432_s5 }
  0x50   : > { %591 = dma.done.wait (%p817_p13), %s186_s29, 128  }
  0x51   : > { %593 = vsyncadd (%p817_p13), %s186_s29, 4294967168  ;;  %p216_p7 = scmp.lt.s32.totalorder %s608_s12, 1  ;;  %vm224_vm0 = vcmask 31744   ;;  %v620_v0 = vmov 0.0   ;;  %v229_v1 = vld [vmem:[%s189_s30] sm:$0xff]  ;;  %v228_v2 = vld [vmem:[%s180_s28 + $0x8] sm:$0xff] }
  0x52   : > { %v231_v3 = vcombine.high %v229_v1, %v229_v1  ;;  %297 = vmatprep.mubr.f32.mxu0 %v228_v2  ;;  %v227_v4 = vld [vmem:[%s180_s28] sm:$0xff] }
  0x53   : > { %s826_s12 = smov (!%p216_p7, %s608_s12), 1 }
  0x54   : > { %s433_s23 = sshll.u32 %s826_s12, 3  ;;  %233 = vmatprep.subr.mxu0 %v231_v3 }
  0x55   : > { %s219_s27 = scalar_lea.vmem %s808_s2, %s433_s23  ;;  %234 = vmatpush1.xpose.msra.mxu0 %v229_v1 }
  0x56   : > { %225 = vst.msk [vmem:[%s219_s27] sm:$0xff] %vm224_vm0, %v620_v0 }
  0x58   : > { %298 = vmatmul.mubr.f32.vlgmr.msra.gmra.mrb[0].mxu0 %v227_v4 }
  0x5d   : > { %v226_v5 = vld [vmem:[%s219_s27] sm:$0xff] }
 0x12b   : > { %v299_v6 = vpop.f32.mrb[0].mxu0 }
 0x12c   : > { %v303_v7 = vadd.f32 %v299_v6, %v226_v5  ;;  %v301_v8 = vpop.f32.mrb[1].mxu0 }
 0x12e   : > { %305 = vst.msk [vmem:[%s219_s27] sm:$0xff] %vm224_vm0, %v303_v7 }
 0x135   : > { %v309_v9 = vld [vmem:[%s219_s27] sm:$0xff] }
 0x136   : > { %v310_v10 = vmul.f32 %v309_v9, %v309_v9 }
 0x138   : > { %v311_v11 = vsel %vm224_vm0, %v310_v10, 0.0 }
 0x139   : > { %312 = vadd.xlane.f32.xlu0 %v311_v11 }
 0x1c6   : > { %v313_v12 = vpop.xlane.xlu0 %312 }
 0x1c7   : > { %v314_v13 = vmax.f32 %v313_v12, 1e-24 }
 0x1c9   : > { %500 = vrsqrt.f32 %v314_v13 }
 0x1d3   : > { %v501_v14 = vpop.eup %500 }
 0x1d4   : > { %v316_v15 = vmul.f32 %v501_v14, %v309_v9 }
 0x1d6   : > { %317 = vst.msk [vmem:[%s219_s27] sm:$0xff] %vm224_vm0, %v316_v15 }
 0x1d7 PF: > { %s18_s14 = sadd.s32 1, %s616_s14   ;;  %s818_s9 = smov %s600_s10 }
 0x1d8   : > { %p15_p9 = scmp.ge.s32.totalorder %s18_s14, 4   ;;  %s819_s10 = smov %s604_s11 }
 0x1d9   : > { %s820_s11 = smov %s685_s21  ;;  %s821_s12 = smov %s612_s13 }
 0x1da   : > { %s822_s13 = smov %s824_s16  ;;  %17 = sbr.rel (!%p15_p9) target bundleno = 6 (0x6), region = 89 }
 0x1e1   :  { %337 = vsyncpa [#allocation3], 1 }
 0x1e2   :  { %339 = vsyncpa [#allocation3 + $0x1], 1 }
 0x1e3   :  { %340 = vsyncpa [#allocation5], 1 }
 0x1e4   :  { %342 = vsyncpa [#allocation5 + $0x1], 1 }

</bundles_post_ra>
